<compile_context>
chip_gen: v6e
topology: v6e:2x2x1
jax: 0.10.0
libtpu: 0.0.40
codegen_flags: <defaults>
</compile_context>

<pallas_src>
import jax
import jax.numpy as jnp
from jax.experimental import pallas as pl
from jax.experimental.pallas import tpu as pltpu

N_SCALES = 6     # rows of the wavelet constructor
N_LEVELS = 17    # diffusion levels P^0 x ... P^16 x
_DYADIC_LEVELS = (1, 2, 4, 8, 16)

# Fixed wavelet constructor from Blis.__init__ (trainable_scales=False).
# Used only by the pure-JAX reference; the kernels hard-code its dyadic
# difference structure.
# TODO(synk): if trainable_scales=True must be supported, add an SMEM-weight
# kernel path that reads the 6x17 matrix at runtime instead of the shortcut.
WAVELET_CONSTRUCTOR = jnp.array(
    [[1, -1.0, 0, 0, 0, 0, 0, 0, 0, 0, 0, 0, 0, 0, 0, 0, 0],
     [0, 1, -1, 0, 0, 0, 0, 0, 0, 0, 0, 0, 0, 0, 0, 0, 0],
     [0, 0, 1, 0, -1, 0, 0, 0, 0, 0, 0, 0, 0, 0, 0, 0, 0],
     [0, 0, 0, 0, 1, 0, 0, 0, -1, 0, 0, 0, 0, 0, 0, 0, 0],
     [0, 0, 0, 0, 0, 0, 0, 0, 1, 0, 0, 0, 0, 0, 0, 0, -1],
     [0, 0, 0, 0, 0, 0, 0, 0, 0, 0, 0, 0, 0, 0, 0, 0, 1]],
    dtype=jnp.float32,
)


def _round_up(v, m):
    return ((v + m - 1) // m) * m


def _vmem_capacity_bytes():
    try:
        cap = int(pltpu.get_tpu_info().vmem_capacity_bytes)
        if cap > 0:
            return cap
    except Exception:
        pass
    return 64 << 20   # conservative fallback (v7x has 64 MiB per TensorCore)


# ----------------------------------------------------------------------------
# Kernels.  Layout: transposed node features xt = x^T [C, N]; P^T [N, N].
# xt @ (P^T)^j == (P^j x)^T, so the MXU sees a full lane-width RHS and every
# output store is lane-dense along N.
# ----------------------------------------------------------------------------
def _blis_chain_kernel(p_ref, x_ref, out_ref):
    """p_ref: VMEM [N, N] = P^T (bf16 or f32); x_ref: VMEM [tc, N] block of x^T;
    out_ref: VMEM [2, 6, tc, N] = (relu(wc), relu(-wc)) per scale."""
    pt = p_ref[...]
    cur = x_ref[...].astype(jnp.float32)
    prev = cur

    def emit(scale, coeff):
        out_ref[0, scale] = jnp.maximum(coeff, 0.0).astype(out_ref.dtype)
        out_ref[1, scale] = jnp.maximum(-coeff, 0.0).astype(out_ref.dtype)

    scale = 0
    for j in range(1, N_LEVELS):
        # f32 accumulation; operands cast to the matmul dtype (bf16 by default).
        cur = jnp.dot(cur.astype(pt.dtype), pt,
                      preferred_element_type=jnp.float32)
        if j in _DYADIC_LEVELS:
            emit(scale, prev - cur)     # wavelet row: P^{2^{s-1}} x - P^{2^s} x
            prev = cur
            scale += 1
    emit(N_SCALES - 1, cur)             # last row: P^16 x itself
    # TODO(synk): for the grid_c==1 latency-bound case, stream each emitted
    # scale to HBM with pltpu.make_async_copy instead of one bulk writeback.


def _blis_powers_kernel(p_ref, x_ref, out_ref):
    """p_ref: VMEM [5, N, N] = (P^T)^{2^k}, k=0..4; x_ref: VMEM [tc, N];
    out_ref: VMEM [2, 6, tc, N].  5 independent applies of the original x."""
    x0 = x_ref[...].astype(jnp.float32)
    lhs = x0.astype(p_ref.dtype)
    prev = x0

    def emit(scale, coeff):
        out_ref[0, scale] = jnp.maximum(coeff, 0.0).astype(out_ref.dtype)
        out_ref[1, scale] = jnp.maximum(-coeff, 0.0).astype(out_ref.dtype)

    cur = x0
    for k in range(5):
        cur = jnp.dot(lhs, p_ref[k], preferred_element_type=jnp.float32)
        emit(k, prev - cur)             # P^{2^{k-1}} x - P^{2^k} x  (k=0: x - Px)
        prev = cur
    emit(N_SCALES - 1, cur)             # P^16 x


# ----------------------------------------------------------------------------
# Operator construction (dense P^T, built directly — no extra transpose).
# ----------------------------------------------------------------------------
def _build_diffusion_operator_t(edge_index, num_nodes, n_pad, dtype=jnp.float32):
    """P = 0.5 * (I + A D^{-1}) matching Diffuse + gcn_norm semantics
    (flow='target_to_source', aggr='add', in-degree at col).  Returns P^T,
    zero-padded to [n_pad, n_pad]."""
    row, col = edge_index[0], edge_index[1]
    e = edge_index.shape[1]
    ones = jnp.ones((e,), dtype=dtype)
    deg = jnp.zeros((num_nodes,), dtype=dtype).at[col].add(ones)
    deg_inv = jnp.where(deg > 0, 1.0 / deg, 0.0)              # inf -> 0
    adj_t = jnp.zeros((n_pad, n_pad), dtype=dtype).at[col, row].add(ones)
    deg_inv_pad = jnp.zeros((n_pad,), dtype=dtype).at[:num_nodes].set(deg_inv)
    idx = jnp.arange(num_nodes)
    eye = jnp.zeros((n_pad, n_pad), dtype=dtype).at[idx, idx].set(1.0)
    return 0.5 * (eye + deg_inv_pad[:, None] * adj_t)


# ----------------------------------------------------------------------------
# pallas_call builder (single-buffered constant P^T block, with fallback).
# ----------------------------------------------------------------------------
def _call_blis(kernel, p_arg, xt, *, out_shape, tc, n_pad, grid_c,
               p_block_shape, p_index_map, vmem_limit, cost):
    def build(p_spec):
        return pl.pallas_call(
            kernel,
            out_shape=out_shape,
            grid_spec=pltpu.PrefetchScalarGridSpec(
                num_scalar_prefetch=0,
                grid=(grid_c,),
                in_specs=[
                    p_spec,                                          # P^T (resident)
                    pl.BlockSpec((tc, n_pad), lambda i: (i, 0)),     # x^T block
                ],
                out_specs=pl.BlockSpec((2, N_SCALES, tc, n_pad),
                                       lambda i: (0, 0, i, 0)),
            ),
            compiler_params=pltpu.CompilerParams(
                dimension_semantics=("parallel",),
                vmem_limit_bytes=vmem_limit,
            ),
            cost_estimate=cost,
        )

    try:
        # P^T never changes across grid steps: single-buffer it so it occupies
        # one VMEM copy instead of the default two.
        p_spec = pl.BlockSpec(p_block_shape, p_index_map,
                              pipeline_mode=pl.Buffered(1))
        return build(p_spec)(p_arg, xt)
    except Exception:
        # TODO(synk): single-buffering of the constant block rejected on this
        # jax/libtpu version; fall back to default double buffering.
        return build(pl.BlockSpec(p_block_shape, p_index_map))(p_arg, xt)


# ----------------------------------------------------------------------------
# Public forward.
# ----------------------------------------------------------------------------
def blis_forward(x, edge_index, *, mode="auto", use_bf16_matmul=True,
                 out_dtype=jnp.float32, lane_dense_output=False):
    """x: [N, C] (or [N]) float node features; edge_index: [2, E] int32.
    Returns s: [N, 6, C, 2] (torch layout) or [2, 6, C, N] if lane_dense_output."""
    x = jnp.asarray(x, jnp.float32)
    if x.ndim == 1:
        x = x[:, None]
    n, c = x.shape

    vmem_cap = _vmem_capacity_bytes()
    n_pad = _round_up(n, 128)                 # lane-dense N (zero padding is inert)
    mat_dtype = jnp.bfloat16 if use_bf16_matmul else jnp.float32
    p_item = jnp.dtype(mat_dtype).itemsize
    out_item = jnp.dtype(out_dtype).itemsize

    pt = _build_diffusion_operator_t(edge_index, n, n_pad)          # f32 [n_pad, n_pad]

    chain_p_bytes = n_pad * n_pad * p_item
    powers_p_bytes = 5 * chain_p_bytes
    if mode == "auto":
        # Repeated squaring wins when the MXU M-dim (channels) would be badly
        # under-filled and all 5 dyadic powers of P^T still fit in VMEM.
        use_powers = (c <= 32) and (2 * powers_p_bytes < int(0.6 * vmem_cap))
    else:
        use_powers = (mode == "powers")

    if use_powers:
        p1 = pt
        p2 = jnp.dot(p1, p1, preferred_element_type=jnp.float32)
        p4 = jnp.dot(p2, p2, preferred_element_type=jnp.float32)
        p8 = jnp.dot(p4, p4, preferred_element_type=jnp.float32)
        p16 = jnp.dot(p8, p8, preferred_element_type=jnp.float32)
        p_arg = jnp.stack([p1, p2, p4, p8, p16]).astype(mat_dtype)  # [5, N, N]
        p_resident = 2 * powers_p_bytes       # worst case (double-buffer fallback)
        p_block_shape = (5, n_pad, n_pad)
        p_index_map = lambda i: (0, 0, 0)
        kernel = _blis_powers_kernel
        n_applies = 5
    else:
        p_arg = pt.astype(mat_dtype)
        p_resident = 2 * chain_p_bytes
        p_block_shape = (n_pad, n_pad)
        p_index_map = lambda i: (0, 0)
        kernel = _blis_chain_kernel
        n_applies = N_LEVELS - 1
    # TODO(synk): if P^T (or its powers) cannot stay VMEM-resident (very large
    # N), stream P row-blocks from HBM with manual DMA instead.

    # Channel tiling from the per-generation VMEM budget (double-buffered x and
    # 12-plane out tiles), capped at 512; minimum one sublane group.
    per_tc = 2 * (n_pad * 4 + 2 * N_SCALES * n_pad * out_item)
    budget = int(0.85 * vmem_cap) - p_resident - (2 << 20)
    tc_fit = max(8, (budget // max(per_tc, 1)) // 8 * 8) if budget > 0 else 8
    tc = int(min(_round_up(c, 8), 512, tc_fit))
    c_pad = _round_up(c, tc)
    grid_c = c_pad // tc
    if grid_c == 1 and c_pad >= 16:
        # Split so dimension_semantics=("parallel",) can use v7x's 2 TensorCores.
        tc = _round_up((c_pad + 1) // 2, 8)
        c_pad = _round_up(c, tc)
        grid_c = c_pad // tc

    xt = jnp.zeros((c_pad, n_pad), jnp.float32).at[:c, :n].set(x.T)

    x_tile = tc * n_pad * 4
    out_tile = 2 * N_SCALES * tc * n_pad * out_item
    vmem_need = p_resident + 2 * (x_tile + out_tile) + (2 << 20)
    vmem_limit = int(min(max(vmem_need, 16 << 20), int(0.9 * vmem_cap)))

    cost = pl.CostEstimate(
        flops=2 * n_applies * n_pad * n_pad * c_pad,
        transcendentals=0,
        bytes_accessed=int(p_arg.size * p_item + 4 * c_pad * n_pad
                           + out_item * 2 * N_SCALES * c_pad * n_pad),
    )

    out = _call_blis(
        kernel, p_arg, xt,
        out_shape=jax.ShapeDtypeStruct((2, N_SCALES, c_pad, n_pad), out_dtype),
        tc=tc, n_pad=n_pad, grid_c=grid_c,
        p_block_shape=p_block_shape, p_index_map=p_index_map,
        vmem_limit=vmem_limit, cost=cost)

    out = out[:, :, :c, :n]                   # drop channel / lane padding
    if lane_dense_output:
        return out                            # [2, 6, C, N]  lane-dense
    # [2, 6, C, N] -> [N, 6, C, 2]  (matches torch cat(...,-1).transpose(1,0))
    return jnp.transpose(out, (3, 1, 2, 0))


# ----------------------------------------------------------------------------
# Pure-JAX reference: literal edge-wise message passing (independent of the
# dense P^T construction used by the kernel).
# ----------------------------------------------------------------------------
def _diffuse_reference(x, edge_index):
    n = x.shape[0]
    row, col = edge_index[0], edge_index[1]
    w = jnp.ones((edge_index.shape[1],), jnp.float32)
    deg = jnp.zeros((n,), jnp.float32).at[col].add(w)
    deg_inv = jnp.where(deg > 0, 1.0 / deg, 0.0)
    msg = (deg_inv[col] * w)[:, None] * x[col]          # message over edges
    prop = jnp.zeros_like(x).at[row].add(msg)           # aggregate at edge_index[0]
    return 0.5 * (x + prop)


def blis_reference(x, edge_index, wavelet=WAVELET_CONSTRUCTOR):
    x = jnp.asarray(x, jnp.float32)
    if x.ndim == 1:
        x = x[:, None]
    levels = [x]
    for _ in range(N_LEVELS - 1):
        levels.append(_diffuse_reference(levels[-1], edge_index))
    diffusion = jnp.stack(levels)                                   # [17, N, C]
    wc = jnp.einsum("ij,jnc->inc", wavelet, diffusion)              # [6, N, C]
    act = jnp.stack([jnp.maximum(wc, 0.0), jnp.maximum(-wc, 0.0)], axis=-1)
    return jnp.transpose(act, (1, 0, 2, 3))                         # [N, 6, C, 2]


if __name__ == "__main__":
    key = jax.random.PRNGKey(0)
    k_x, k_src, k_dst = jax.random.split(key, 3)

    num_nodes, in_channels, num_edges = 16, 4, 32
    x = jax.random.normal(k_x, (num_nodes, in_channels), dtype=jnp.float32)
    edge_index = jnp.stack(
        [jax.random.randint(k_src, (num_edges,), 0, num_nodes, dtype=jnp.int32),
         jax.random.randint(k_dst, (num_edges,), 0, num_nodes, dtype=jnp.int32)])

    s_ref = blis_reference(x, edge_index)

    # Default path (auto => repeated-squaring for tiny C, bf16 MXU operands).
    s = jax.block_until_ready(blis_forward(x, edge_index))
    assert s.shape == (num_nodes, N_SCALES, in_channels, 2), s.shape
    assert jnp.allclose(s, s_ref, atol=5e-2, rtol=5e-2), "bf16 path mismatch"

    # f32 chained-diffusion path: exact check against the reference.
    s_chain = jax.block_until_ready(
        blis_forward(x, edge_index, mode="chain", use_bf16_matmul=False))
    assert jnp.allclose(s_chain, s_ref, atol=1e-5, rtol=1e-5), "chain mismatch"

    # f32 repeated-squaring path: exact check against the reference.
    s_pows = jax.block_until_ready(
        blis_forward(x, edge_index, mode="powers", use_bf16_matmul=False))
    assert jnp.allclose(s_pows, s_ref, atol=1e-5, rtol=1e-5), "powers mismatch"

    print("KERNEL_OK")
</pallas_src>

<mosaic_0001>
module attributes {stable_mosaic.version = 11 : i64} {
  func.func @_blis_powers_kernel(%arg0: i32, %arg1: memref<5x128x128xbf16, #tpu.memory_space<vmem>>, %arg2: memref<8x128xf32, #tpu.memory_space<vmem>>, %arg3: memref<2x6x8x128xf32, #tpu.memory_space<vmem>>) attributes {dimension_semantics = [#tpu.dimension_semantics<parallel>], iteration_bounds = array<i64: 1>, scalar_prefetch = 0 : i64, scratch_operands = 0 : i64, tpu.core_type = #tpu.core_type<tc>, window_params = [{pipeline_mode = #tpu.pipeline_mode<synchronous>, transform_indices = @transform_0, window_bounds = array<i64: 5, 128, 128>}, {transform_indices = @transform_1, window_bounds = array<i64: 8, 128>}, {transform_indices = @transform_2, window_bounds = array<i64: 2, 6, 8, 128>}]} {
    %c0 = arith.constant 0 : index
    %c0_0 = arith.constant 0 : index
    %0 = vector.load %arg2[%c0, %c0_0] : memref<8x128xf32, #tpu.memory_space<vmem>>, vector<8x128xf32>
    %1 = arith.truncf %0 : vector<8x128xf32> to vector<8x128xbf16>
    %c0_1 = arith.constant 0 : index
    %c0_2 = arith.constant 0 : index
    %c0_3 = arith.constant 0 : index
    %2 = vector.load %arg1[%c0_1, %c0_2, %c0_3] : memref<5x128x128xbf16, #tpu.memory_space<vmem>>, vector<1x128x128xbf16>
    %3 = vector.shape_cast %2 : vector<1x128x128xbf16> to vector<128x128xbf16>
    %cst = arith.constant dense<0.000000e+00> : vector<8x128xf32>
    %4 = tpu.matmul %1, %3, %cst {dimension_numbers = #tpu.dot_dimension_numbers<[1], [0], [0], [1], [0, 0, 1, 1], [], []>} : vector<8x128xbf16>, vector<128x128xbf16>, vector<8x128xf32> -> vector<8x128xf32>
    %5 = arith.subf %0, %4 : vector<8x128xf32>
    %cst_4 = arith.constant 0.000000e+00 : f32
    %6 = vector.broadcast %cst_4 : f32 to vector<8x128xf32>
    %7 = arith.maximumf %5, %6 : vector<8x128xf32>
    %c0_5 = arith.constant 0 : index
    %c0_6 = arith.constant 0 : index
    %c0_7 = arith.constant 0 : index
    %c0_8 = arith.constant 0 : index
    %8 = vector.load %arg3[%c0_5, %c0_6, %c0_7, %c0_8] : memref<2x6x8x128xf32, #tpu.memory_space<vmem>>, vector<1x1x8x128xf32>
    %9 = vector.shape_cast %8 : vector<1x1x8x128xf32> to vector<8x128xf32>
    %10 = vector.shape_cast %7 : vector<8x128xf32> to vector<1x1x8x128xf32>
    tpu.vector_store %arg3[%c0_5, %c0_6, %c0_7, %c0_8], %10 {strides = array<i32>} : memref<2x6x8x128xf32, #tpu.memory_space<vmem>>, vector<1x1x8x128xf32>,
    %cst_9 = arith.constant 0.000000e+00 : f32
    %11 = vector.broadcast %cst_9 : f32 to vector<8x128xf32>
    %12 = arith.subf %11, %5 : vector<8x128xf32>
    %cst_10 = arith.constant 0.000000e+00 : f32
    %13 = vector.broadcast %cst_10 : f32 to vector<8x128xf32>
    %14 = arith.maximumf %12, %13 : vector<8x128xf32>
    %c1 = arith.constant 1 : index
    %c0_11 = arith.constant 0 : index
    %c0_12 = arith.constant 0 : index
    %c0_13 = arith.constant 0 : index
    %15 = vector.load %arg3[%c1, %c0_11, %c0_12, %c0_13] : memref<2x6x8x128xf32, #tpu.memory_space<vmem>>, vector<1x1x8x128xf32>
    %16 = vector.shape_cast %15 : vector<1x1x8x128xf32> to vector<8x128xf32>
    %17 = vector.shape_cast %14 : vector<8x128xf32> to vector<1x1x8x128xf32>
    tpu.vector_store %arg3[%c1, %c0_11, %c0_12, %c0_13], %17 {strides = array<i32>} : memref<2x6x8x128xf32, #tpu.memory_space<vmem>>, vector<1x1x8x128xf32>,
    %c1_14 = arith.constant 1 : index
    %c0_15 = arith.constant 0 : index
    %c0_16 = arith.constant 0 : index
    %18 = vector.load %arg1[%c1_14, %c0_15, %c0_16] : memref<5x128x128xbf16, #tpu.memory_space<vmem>>, vector<1x128x128xbf16>
    %19 = vector.shape_cast %18 : vector<1x128x128xbf16> to vector<128x128xbf16>
    %cst_17 = arith.constant dense<0.000000e+00> : vector<8x128xf32>
    %20 = tpu.matmul %1, %19, %cst_17 {dimension_numbers = #tpu.dot_dimension_numbers<[1], [0], [0], [1], [0, 0, 1, 1], [], []>} : vector<8x128xbf16>, vector<128x128xbf16>, vector<8x128xf32> -> vector<8x128xf32>
    %21 = arith.subf %4, %20 : vector<8x128xf32>
    %cst_18 = arith.constant 0.000000e+00 : f32
    %22 = vector.broadcast %cst_18 : f32 to vector<8x128xf32>
    %23 = arith.maximumf %21, %22 : vector<8x128xf32>
    %c0_19 = arith.constant 0 : index
    %c1_20 = arith.constant 1 : index
    %c0_21 = arith.constant 0 : index
    %c0_22 = arith.constant 0 : index
    %24 = vector.load %arg3[%c0_19, %c1_20, %c0_21, %c0_22] : memref<2x6x8x128xf32, #tpu.memory_space<vmem>>, vector<1x1x8x128xf32>
    %25 = vector.shape_cast %24 : vector<1x1x8x128xf32> to vector<8x128xf32>
    %26 = vector.shape_cast %23 : vector<8x128xf32> to vector<1x1x8x128xf32>
    tpu.vector_store %arg3[%c0_19, %c1_20, %c0_21, %c0_22], %26 {strides = array<i32>} : memref<2x6x8x128xf32, #tpu.memory_space<vmem>>, vector<1x1x8x128xf32>,
    %cst_23 = arith.constant 0.000000e+00 : f32
    %27 = vector.broadcast %cst_23 : f32 to vector<8x128xf32>
    %28 = arith.subf %27, %21 : vector<8x128xf32>
    %cst_24 = arith.constant 0.000000e+00 : f32
    %29 = vector.broadcast %cst_24 : f32 to vector<8x128xf32>
    %30 = arith.maximumf %28, %29 : vector<8x128xf32>
    %c1_25 = arith.constant 1 : index
    %c1_26 = arith.constant 1 : index
    %c0_27 = arith.constant 0 : index
    %c0_28 = arith.constant 0 : index
    %31 = vector.load %arg3[%c1_25, %c1_26, %c0_27, %c0_28] : memref<2x6x8x128xf32, #tpu.memory_space<vmem>>, vector<1x1x8x128xf32>
    %32 = vector.shape_cast %31 : vector<1x1x8x128xf32> to vector<8x128xf32>
    %33 = vector.shape_cast %30 : vector<8x128xf32> to vector<1x1x8x128xf32>
    tpu.vector_store %arg3[%c1_25, %c1_26, %c0_27, %c0_28], %33 {strides = array<i32>} : memref<2x6x8x128xf32, #tpu.memory_space<vmem>>, vector<1x1x8x128xf32>,
    %c2 = arith.constant 2 : index
    %c0_29 = arith.constant 0 : index
    %c0_30 = arith.constant 0 : index
    %34 = vector.load %arg1[%c2, %c0_29, %c0_30] : memref<5x128x128xbf16, #tpu.memory_space<vmem>>, vector<1x128x128xbf16>
    %35 = vector.shape_cast %34 : vector<1x128x128xbf16> to vector<128x128xbf16>
    %cst_31 = arith.constant dense<0.000000e+00> : vector<8x128xf32>
    %36 = tpu.matmul %1, %35, %cst_31 {dimension_numbers = #tpu.dot_dimension_numbers<[1], [0], [0], [1], [0, 0, 1, 1], [], []>} : vector<8x128xbf16>, vector<128x128xbf16>, vector<8x128xf32> -> vector<8x128xf32>
    %37 = arith.subf %20, %36 : vector<8x128xf32>
    %cst_32 = arith.constant 0.000000e+00 : f32
    %38 = vector.broadcast %cst_32 : f32 to vector<8x128xf32>
    %39 = arith.maximumf %37, %38 : vector<8x128xf32>
    %c0_33 = arith.constant 0 : index
    %c2_34 = arith.constant 2 : index
    %c0_35 = arith.constant 0 : index
    %c0_36 = arith.constant 0 : index
    %40 = vector.load %arg3[%c0_33, %c2_34, %c0_35, %c0_36] : memref<2x6x8x128xf32, #tpu.memory_space<vmem>>, vector<1x1x8x128xf32>
    %41 = vector.shape_cast %40 : vector<1x1x8x128xf32> to vector<8x128xf32>
    %42 = vector.shape_cast %39 : vector<8x128xf32> to vector<1x1x8x128xf32>
    tpu.vector_store %arg3[%c0_33, %c2_34, %c0_35, %c0_36], %42 {strides = array<i32>} : memref<2x6x8x128xf32, #tpu.memory_space<vmem>>, vector<1x1x8x128xf32>,
    %cst_37 = arith.constant 0.000000e+00 : f32
    %43 = vector.broadcast %cst_37 : f32 to vector<8x128xf32>
    %44 = arith.subf %43, %37 : vector<8x128xf32>
    %cst_38 = arith.constant 0.000000e+00 : f32
    %45 = vector.broadcast %cst_38 : f32 to vector<8x128xf32>
    %46 = arith.maximumf %44, %45 : vector<8x128xf32>
    %c1_39 = arith.constant 1 : index
    %c2_40 = arith.constant 2 : index
    %c0_41 = arith.constant 0 : index
    %c0_42 = arith.constant 0 : index
    %47 = vector.load %arg3[%c1_39, %c2_40, %c0_41, %c0_42] : memref<2x6x8x128xf32, #tpu.memory_space<vmem>>, vector<1x1x8x128xf32>
    %48 = vector.shape_cast %47 : vector<1x1x8x128xf32> to vector<8x128xf32>
    %49 = vector.shape_cast %46 : vector<8x128xf32> to vector<1x1x8x128xf32>
    tpu.vector_store %arg3[%c1_39, %c2_40, %c0_41, %c0_42], %49 {strides = array<i32>} : memref<2x6x8x128xf32, #tpu.memory_space<vmem>>, vector<1x1x8x128xf32>,
    %c3 = arith.constant 3 : index
    %c0_43 = arith.constant 0 : index
    %c0_44 = arith.constant 0 : index
    %50 = vector.load %arg1[%c3, %c0_43, %c0_44] : memref<5x128x128xbf16, #tpu.memory_space<vmem>>, vector<1x128x128xbf16>
    %51 = vector.shape_cast %50 : vector<1x128x128xbf16> to vector<128x128xbf16>
    %cst_45 = arith.constant dense<0.000000e+00> : vector<8x128xf32>
    %52 = tpu.matmul %1, %51, %cst_45 {dimension_numbers = #tpu.dot_dimension_numbers<[1], [0], [0], [1], [0, 0, 1, 1], [], []>} : vector<8x128xbf16>, vector<128x128xbf16>, vector<8x128xf32> -> vector<8x128xf32>
    %53 = arith.subf %36, %52 : vector<8x128xf32>
    %cst_46 = arith.constant 0.000000e+00 : f32
    %54 = vector.broadcast %cst_46 : f32 to vector<8x128xf32>
    %55 = arith.maximumf %53, %54 : vector<8x128xf32>
    %c0_47 = arith.constant 0 : index
    %c3_48 = arith.constant 3 : index
    %c0_49 = arith.constant 0 : index
    %c0_50 = arith.constant 0 : index
    %56 = vector.load %arg3[%c0_47, %c3_48, %c0_49, %c0_50] : memref<2x6x8x128xf32, #tpu.memory_space<vmem>>, vector<1x1x8x128xf32>
    %57 = vector.shape_cast %56 : vector<1x1x8x128xf32> to vector<8x128xf32>
    %58 = vector.shape_cast %55 : vector<8x128xf32> to vector<1x1x8x128xf32>
    tpu.vector_store %arg3[%c0_47, %c3_48, %c0_49, %c0_50], %58 {strides = array<i32>} : memref<2x6x8x128xf32, #tpu.memory_space<vmem>>, vector<1x1x8x128xf32>,
    %cst_51 = arith.constant 0.000000e+00 : f32
    %59 = vector.broadcast %cst_51 : f32 to vector<8x128xf32>
    %60 = arith.subf %59, %53 : vector<8x128xf32>
    %cst_52 = arith.constant 0.000000e+00 : f32
    %61 = vector.broadcast %cst_52 : f32 to vector<8x128xf32>
    %62 = arith.maximumf %60, %61 : vector<8x128xf32>
    %c1_53 = arith.constant 1 : index
    %c3_54 = arith.constant 3 : index
    %c0_55 = arith.constant 0 : index
    %c0_56 = arith.constant 0 : index
    %63 = vector.load %arg3[%c1_53, %c3_54, %c0_55, %c0_56] : memref<2x6x8x128xf32, #tpu.memory_space<vmem>>, vector<1x1x8x128xf32>
    %64 = vector.shape_cast %63 : vector<1x1x8x128xf32> to vector<8x128xf32>
    %65 = vector.shape_cast %62 : vector<8x128xf32> to vector<1x1x8x128xf32>
    tpu.vector_store %arg3[%c1_53, %c3_54, %c0_55, %c0_56], %65 {strides = array<i32>} : memref<2x6x8x128xf32, #tpu.memory_space<vmem>>, vector<1x1x8x128xf32>,
    %c4 = arith.constant 4 : index
    %c0_57 = arith.constant 0 : index
    %c0_58 = arith.constant 0 : index
    %66 = vector.load %arg1[%c4, %c0_57, %c0_58] : memref<5x128x128xbf16, #tpu.memory_space<vmem>>, vector<1x128x128xbf16>
    %67 = vector.shape_cast %66 : vector<1x128x128xbf16> to vector<128x128xbf16>
    %cst_59 = arith.constant dense<0.000000e+00> : vector<8x128xf32>
    %68 = tpu.matmul %1, %67, %cst_59 {dimension_numbers = #tpu.dot_dimension_numbers<[1], [0], [0], [1], [0, 0, 1, 1], [], []>} : vector<8x128xbf16>, vector<128x128xbf16>, vector<8x128xf32> -> vector<8x128xf32>
    %69 = arith.subf %52, %68 : vector<8x128xf32>
    %cst_60 = arith.constant 0.000000e+00 : f32
    %70 = vector.broadcast %cst_60 : f32 to vector<8x128xf32>
    %71 = arith.maximumf %69, %70 : vector<8x128xf32>
    %c0_61 = arith.constant 0 : index
    %c4_62 = arith.constant 4 : index
    %c0_63 = arith.constant 0 : index
    %c0_64 = arith.constant 0 : index
    %72 = vector.load %arg3[%c0_61, %c4_62, %c0_63, %c0_64] : memref<2x6x8x128xf32, #tpu.memory_space<vmem>>, vector<1x1x8x128xf32>
    %73 = vector.shape_cast %72 : vector<1x1x8x128xf32> to vector<8x128xf32>
    %74 = vector.shape_cast %71 : vector<8x128xf32> to vector<1x1x8x128xf32>
    tpu.vector_store %arg3[%c0_61, %c4_62, %c0_63, %c0_64], %74 {strides = array<i32>} : memref<2x6x8x128xf32, #tpu.memory_space<vmem>>, vector<1x1x8x128xf32>,
    %cst_65 = arith.constant 0.000000e+00 : f32
    %75 = vector.broadcast %cst_65 : f32 to vector<8x128xf32>
    %76 = arith.subf %75, %69 : vector<8x128xf32>
    %cst_66 = arith.constant 0.000000e+00 : f32
    %77 = vector.broadcast %cst_66 : f32 to vector<8x128xf32>
    %78 = arith.maximumf %76, %77 : vector<8x128xf32>
    %c1_67 = arith.constant 1 : index
    %c4_68 = arith.constant 4 : index
    %c0_69 = arith.constant 0 : index
    %c0_70 = arith.constant 0 : index
    %79 = vector.load %arg3[%c1_67, %c4_68, %c0_69, %c0_70] : memref<2x6x8x128xf32, #tpu.memory_space<vmem>>, vector<1x1x8x128xf32>
    %80 = vector.shape_cast %79 : vector<1x1x8x128xf32> to vector<8x128xf32>
    %81 = vector.shape_cast %78 : vector<8x128xf32> to vector<1x1x8x128xf32>
    tpu.vector_store %arg3[%c1_67, %c4_68, %c0_69, %c0_70], %81 {strides = array<i32>} : memref<2x6x8x128xf32, #tpu.memory_space<vmem>>, vector<1x1x8x128xf32>,
    %cst_71 = arith.constant 0.000000e+00 : f32
    %82 = vector.broadcast %cst_71 : f32 to vector<8x128xf32>
    %83 = arith.maximumf %68, %82 : vector<8x128xf32>
    %c0_72 = arith.constant 0 : index
    %c5 = arith.constant 5 : index
    %c0_73 = arith.constant 0 : index
    %c0_74 = arith.constant 0 : index
    %84 = vector.load %arg3[%c0_72, %c5, %c0_73, %c0_74] : memref<2x6x8x128xf32, #tpu.memory_space<vmem>>, vector<1x1x8x128xf32>
    %85 = vector.shape_cast %84 : vector<1x1x8x128xf32> to vector<8x128xf32>
    %86 = vector.shape_cast %83 : vector<8x128xf32> to vector<1x1x8x128xf32>
    tpu.vector_store %arg3[%c0_72, %c5, %c0_73, %c0_74], %86 {strides = array<i32>} : memref<2x6x8x128xf32, #tpu.memory_space<vmem>>, vector<1x1x8x128xf32>,
    %cst_75 = arith.constant 0.000000e+00 : f32
    %87 = vector.broadcast %cst_75 : f32 to vector<8x128xf32>
    %88 = arith.subf %87, %68 : vector<8x128xf32>
    %cst_76 = arith.constant 0.000000e+00 : f32
    %89 = vector.broadcast %cst_76 : f32 to vector<8x128xf32>
    %90 = arith.maximumf %88, %89 : vector<8x128xf32>
    %c1_77 = arith.constant 1 : index
    %c5_78 = arith.constant 5 : index
    %c0_79 = arith.constant 0 : index
    %c0_80 = arith.constant 0 : index
    %91 = vector.load %arg3[%c1_77, %c5_78, %c0_79, %c0_80] : memref<2x6x8x128xf32, #tpu.memory_space<vmem>>, vector<1x1x8x128xf32>
    %92 = vector.shape_cast %91 : vector<1x1x8x128xf32> to vector<8x128xf32>
    %93 = vector.shape_cast %90 : vector<8x128xf32> to vector<1x1x8x128xf32>
    tpu.vector_store %arg3[%c1_77, %c5_78, %c0_79, %c0_80], %93 {strides = array<i32>} : memref<2x6x8x128xf32, #tpu.memory_space<vmem>>, vector<1x1x8x128xf32>,
    return
  }
  func.func @transform_0(%arg0: i32) -> (i32, i32, i32) {
    %c0_i32 = arith.constant 0 : i32
    %c0_i32_0 = arith.constant 0 : i32
    %c0_i32_1 = arith.constant 0 : i32
    %c0_i32_2 = arith.constant 0 : i32
    return %c0_i32, %c0_i32_0, %c0_i32_1 : i32, i32, i32
  }
  func.func @transform_1(%arg0: i32) -> (i32, i32) {
    %c0_i32 = arith.constant 0 : i32
    %c0_i32_0 = arith.constant 0 : i32
    return %arg0, %c0_i32 : i32, i32
  }
  func.func @transform_2(%arg0: i32) -> (i32, i32, i32, i32) {
    %c0_i32 = arith.constant 0 : i32
    %c0_i32_0 = arith.constant 0 : i32
    %c0_i32_1 = arith.constant 0 : i32
    %c0_i32_2 = arith.constant 0 : i32
    return %c0_i32, %c0_i32_0, %arg0, %c0_i32_1 : i32, i32, i32, i32
  }
}

module attributes {stable_mosaic.version = 11 : i64} {
  func.func @_blis_powers_kernel(%arg0: i32, %arg1: memref<5x128x128xbf16, #tpu.memory_space<vmem>>, %arg2: memref<8x128xf32, #tpu.memory_space<vmem>>, %arg3: memref<2x6x8x128xf32, #tpu.memory_space<vmem>>) attributes {dimension_semantics = [#tpu.dimension_semantics<parallel>], iteration_bounds = array<i64: 1>, scalar_prefetch = 0 : i64, scratch_operands = 0 : i64, tpu.core_type = #tpu.core_type<tc>, window_params = [{pipeline_mode = #tpu.pipeline_mode<synchronous>, transform_indices = @transform_0, window_bounds = array<i64: 5, 128, 128>}, {transform_indices = @transform_1, window_bounds = array<i64: 8, 128>}, {transform_indices = @transform_2, window_bounds = array<i64: 2, 6, 8, 128>}]} {
    %c0 = arith.constant 0 : index
    %c0_0 = arith.constant 0 : index
    %0 = vector.load %arg2[%c0, %c0_0] : memref<8x128xf32, #tpu.memory_space<vmem>>, vector<8x128xf32>
    %1 = arith.truncf %0 : vector<8x128xf32> to vector<8x128xbf16>
    %c0_1 = arith.constant 0 : index
    %c0_2 = arith.constant 0 : index
    %c0_3 = arith.constant 0 : index
    %2 = vector.load %arg1[%c0_1, %c0_2, %c0_3] : memref<5x128x128xbf16, #tpu.memory_space<vmem>>, vector<1x128x128xbf16>
    %3 = vector.shape_cast %2 : vector<1x128x128xbf16> to vector<128x128xbf16>
    %cst = arith.constant dense<0.000000e+00> : vector<8x128xf32>
    %4 = tpu.matmul %1, %3, %cst {dimension_numbers = #tpu.dot_dimension_numbers<[1], [0], [0], [1], [0, 0, 1, 1], [], []>} : vector<8x128xbf16>, vector<128x128xbf16>, vector<8x128xf32> -> vector<8x128xf32>
    %5 = arith.subf %0, %4 : vector<8x128xf32>
    %cst_4 = arith.constant 0.000000e+00 : f32
    %6 = vector.broadcast %cst_4 : f32 to vector<8x128xf32>
    %7 = arith.maximumf %5, %6 : vector<8x128xf32>
    %c0_5 = arith.constant 0 : index
    %c0_6 = arith.constant 0 : index
    %c0_7 = arith.constant 0 : index
    %c0_8 = arith.constant 0 : index
    %8 = vector.load %arg3[%c0_5, %c0_6, %c0_7, %c0_8] : memref<2x6x8x128xf32, #tpu.memory_space<vmem>>, vector<1x1x8x128xf32>
    %9 = vector.shape_cast %8 : vector<1x1x8x128xf32> to vector<8x128xf32>
    %10 = vector.shape_cast %7 : vector<8x128xf32> to vector<1x1x8x128xf32>
    tpu.vector_store %arg3[%c0_5, %c0_6, %c0_7, %c0_8], %10 {strides = array<i32>} : memref<2x6x8x128xf32, #tpu.memory_space<vmem>>, vector<1x1x8x128xf32>,
    %cst_9 = arith.constant 0.000000e+00 : f32
    %11 = vector.broadcast %cst_9 : f32 to vector<8x128xf32>
    %12 = arith.subf %11, %5 : vector<8x128xf32>
    %cst_10 = arith.constant 0.000000e+00 : f32
    %13 = vector.broadcast %cst_10 : f32 to vector<8x128xf32>
    %14 = arith.maximumf %12, %13 : vector<8x128xf32>
    %c1 = arith.constant 1 : index
    %c0_11 = arith.constant 0 : index
    %c0_12 = arith.constant 0 : index
    %c0_13 = arith.constant 0 : index
    %15 = vector.load %arg3[%c1, %c0_11, %c0_12, %c0_13] : memref<2x6x8x128xf32, #tpu.memory_space<vmem>>, vector<1x1x8x128xf32>
    %16 = vector.shape_cast %15 : vector<1x1x8x128xf32> to vector<8x128xf32>
    %17 = vector.shape_cast %14 : vector<8x128xf32> to vector<1x1x8x128xf32>
    tpu.vector_store %arg3[%c1, %c0_11, %c0_12, %c0_13], %17 {strides = array<i32>} : memref<2x6x8x128xf32, #tpu.memory_space<vmem>>, vector<1x1x8x128xf32>,
    %c1_14 = arith.constant 1 : index
    %c0_15 = arith.constant 0 : index
    %c0_16 = arith.constant 0 : index
    %18 = vector.load %arg1[%c1_14, %c0_15, %c0_16] : memref<5x128x128xbf16, #tpu.memory_space<vmem>>, vector<1x128x128xbf16>
    %19 = vector.shape_cast %18 : vector<1x128x128xbf16> to vector<128x128xbf16>
    %cst_17 = arith.constant dense<0.000000e+00> : vector<8x128xf32>
    %20 = tpu.matmul %1, %19, %cst_17 {dimension_numbers = #tpu.dot_dimension_numbers<[1], [0], [0], [1], [0, 0, 1, 1], [], []>} : vector<8x128xbf16>, vector<128x128xbf16>, vector<8x128xf32> -> vector<8x128xf32>
    %21 = arith.subf %4, %20 : vector<8x128xf32>
    %cst_18 = arith.constant 0.000000e+00 : f32
    %22 = vector.broadcast %cst_18 : f32 to vector<8x128xf32>
    %23 = arith.maximumf %21, %22 : vector<8x128xf32>
    %c0_19 = arith.constant 0 : index
    %c1_20 = arith.constant 1 : index
    %c0_21 = arith.constant 0 : index
    %c0_22 = arith.constant 0 : index
    %24 = vector.load %arg3[%c0_19, %c1_20, %c0_21, %c0_22] : memref<2x6x8x128xf32, #tpu.memory_space<vmem>>, vector<1x1x8x128xf32>
    %25 = vector.shape_cast %24 : vector<1x1x8x128xf32> to vector<8x128xf32>
    %26 = vector.shape_cast %23 : vector<8x128xf32> to vector<1x1x8x128xf32>
    tpu.vector_store %arg3[%c0_19, %c1_20, %c0_21, %c0_22], %26 {strides = array<i32>} : memref<2x6x8x128xf32, #tpu.memory_space<vmem>>, vector<1x1x8x128xf32>,
    %cst_23 = arith.constant 0.000000e+00 : f32
    %27 = vector.broadcast %cst_23 : f32 to vector<8x128xf32>
    %28 = arith.subf %27, %21 : vector<8x128xf32>
    %cst_24 = arith.constant 0.000000e+00 : f32
    %29 = vector.broadcast %cst_24 : f32 to vector<8x128xf32>
    %30 = arith.maximumf %28, %29 : vector<8x128xf32>
    %c1_25 = arith.constant 1 : index
    %c1_26 = arith.constant 1 : index
    %c0_27 = arith.constant 0 : index
    %c0_28 = arith.constant 0 : index
    %31 = vector.load %arg3[%c1_25, %c1_26, %c0_27, %c0_28] : memref<2x6x8x128xf32, #tpu.memory_space<vmem>>, vector<1x1x8x128xf32>
    %32 = vector.shape_cast %31 : vector<1x1x8x128xf32> to vector<8x128xf32>
    %33 = vector.shape_cast %30 : vector<8x128xf32> to vector<1x1x8x128xf32>
    tpu.vector_store %arg3[%c1_25, %c1_26, %c0_27, %c0_28], %33 {strides = array<i32>} : memref<2x6x8x128xf32, #tpu.memory_space<vmem>>, vector<1x1x8x128xf32>,
    %c2 = arith.constant 2 : index
    %c0_29 = arith.constant 0 : index
    %c0_30 = arith.constant 0 : index
    %34 = vector.load %arg1[%c2, %c0_29, %c0_30] : memref<5x128x128xbf16, #tpu.memory_space<vmem>>, vector<1x128x128xbf16>
    %35 = vector.shape_cast %34 : vector<1x128x128xbf16> to vector<128x128xbf16>
    %cst_31 = arith.constant dense<0.000000e+00> : vector<8x128xf32>
    %36 = tpu.matmul %1, %35, %cst_31 {dimension_numbers = #tpu.dot_dimension_numbers<[1], [0], [0], [1], [0, 0, 1, 1], [], []>} : vector<8x128xbf16>, vector<128x128xbf16>, vector<8x128xf32> -> vector<8x128xf32>
    %37 = arith.subf %20, %36 : vector<8x128xf32>
    %cst_32 = arith.constant 0.000000e+00 : f32
    %38 = vector.broadcast %cst_32 : f32 to vector<8x128xf32>
    %39 = arith.maximumf %37, %38 : vector<8x128xf32>
    %c0_33 = arith.constant 0 : index
    %c2_34 = arith.constant 2 : index
    %c0_35 = arith.constant 0 : index
    %c0_36 = arith.constant 0 : index
    %40 = vector.load %arg3[%c0_33, %c2_34, %c0_35, %c0_36] : memref<2x6x8x128xf32, #tpu.memory_space<vmem>>, vector<1x1x8x128xf32>
    %41 = vector.shape_cast %40 : vector<1x1x8x128xf32> to vector<8x128xf32>
    %42 = vector.shape_cast %39 : vector<8x128xf32> to vector<1x1x8x128xf32>
    tpu.vector_store %arg3[%c0_33, %c2_34, %c0_35, %c0_36], %42 {strides = array<i32>} : memref<2x6x8x128xf32, #tpu.memory_space<vmem>>, vector<1x1x8x128xf32>,
    %cst_37 = arith.constant 0.000000e+00 : f32
    %43 = vector.broadcast %cst_37 : f32 to vector<8x128xf32>
    %44 = arith.subf %43, %37 : vector<8x128xf32>
    %cst_38 = arith.constant 0.000000e+00 : f32
    %45 = vector.broadcast %cst_38 : f32 to vector<8x128xf32>
    %46 = arith.maximumf %44, %45 : vector<8x128xf32>
    %c1_39 = arith.constant 1 : index
    %c2_40 = arith.constant 2 : index
    %c0_41 = arith.constant 0 : index
    %c0_42 = arith.constant 0 : index
    %47 = vector.load %arg3[%c1_39, %c2_40, %c0_41, %c0_42] : memref<2x6x8x128xf32, #tpu.memory_space<vmem>>, vector<1x1x8x128xf32>
    %48 = vector.shape_cast %47 : vector<1x1x8x128xf32> to vector<8x128xf32>
    %49 = vector.shape_cast %46 : vector<8x128xf32> to vector<1x1x8x128xf32>
    tpu.vector_store %arg3[%c1_39, %c2_40, %c0_41, %c0_42], %49 {strides = array<i32>} : memref<2x6x8x128xf32, #tpu.memory_space<vmem>>, vector<1x1x8x128xf32>,
    %c3 = arith.constant 3 : index
    %c0_43 = arith.constant 0 : index
    %c0_44 = arith.constant 0 : index
    %50 = vector.load %arg1[%c3, %c0_43, %c0_44] : memref<5x128x128xbf16, #tpu.memory_space<vmem>>, vector<1x128x128xbf16>
    %51 = vector.shape_cast %50 : vector<1x128x128xbf16> to vector<128x128xbf16>
    %cst_45 = arith.constant dense<0.000000e+00> : vector<8x128xf32>
    %52 = tpu.matmul %1, %51, %cst_45 {dimension_numbers = #tpu.dot_dimension_numbers<[1], [0], [0], [1], [0, 0, 1, 1], [], []>} : vector<8x128xbf16>, vector<128x128xbf16>, vector<8x128xf32> -> vector<8x128xf32>
    %53 = arith.subf %36, %52 : vector<8x128xf32>
    %cst_46 = arith.constant 0.000000e+00 : f32
    %54 = vector.broadcast %cst_46 : f32 to vector<8x128xf32>
    %55 = arith.maximumf %53, %54 : vector<8x128xf32>
    %c0_47 = arith.constant 0 : index
    %c3_48 = arith.constant 3 : index
    %c0_49 = arith.constant 0 : index
    %c0_50 = arith.constant 0 : index
    %56 = vector.load %arg3[%c0_47, %c3_48, %c0_49, %c0_50] : memref<2x6x8x128xf32, #tpu.memory_space<vmem>>, vector<1x1x8x128xf32>
    %57 = vector.shape_cast %56 : vector<1x1x8x128xf32> to vector<8x128xf32>
    %58 = vector.shape_cast %55 : vector<8x128xf32> to vector<1x1x8x128xf32>
    tpu.vector_store %arg3[%c0_47, %c3_48, %c0_49, %c0_50], %58 {strides = array<i32>} : memref<2x6x8x128xf32, #tpu.memory_space<vmem>>, vector<1x1x8x128xf32>,
    %cst_51 = arith.constant 0.000000e+00 : f32
    %59 = vector.broadcast %cst_51 : f32 to vector<8x128xf32>
    %60 = arith.subf %59, %53 : vector<8x128xf32>
    %cst_52 = arith.constant 0.000000e+00 : f32
    %61 = vector.broadcast %cst_52 : f32 to vector<8x128xf32>
    %62 = arith.maximumf %60, %61 : vector<8x128xf32>
    %c1_53 = arith.constant 1 : index
    %c3_54 = arith.constant 3 : index
    %c0_55 = arith.constant 0 : index
    %c0_56 = arith.constant 0 : index
    %63 = vector.load %arg3[%c1_53, %c3_54, %c0_55, %c0_56] : memref<2x6x8x128xf32, #tpu.memory_space<vmem>>, vector<1x1x8x128xf32>
    %64 = vector.shape_cast %63 : vector<1x1x8x128xf32> to vector<8x128xf32>
    %65 = vector.shape_cast %62 : vector<8x128xf32> to vector<1x1x8x128xf32>
    tpu.vector_store %arg3[%c1_53, %c3_54, %c0_55, %c0_56], %65 {strides = array<i32>} : memref<2x6x8x128xf32, #tpu.memory_space<vmem>>, vector<1x1x8x128xf32>,
    %c4 = arith.constant 4 : index
    %c0_57 = arith.constant 0 : index
    %c0_58 = arith.constant 0 : index
    %66 = vector.load %arg1[%c4, %c0_57, %c0_58] : memref<5x128x128xbf16, #tpu.memory_space<vmem>>, vector<1x128x128xbf16>
    %67 = vector.shape_cast %66 : vector<1x128x128xbf16> to vector<128x128xbf16>
    %cst_59 = arith.constant dense<0.000000e+00> : vector<8x128xf32>
    %68 = tpu.matmul %1, %67, %cst_59 {dimension_numbers = #tpu.dot_dimension_numbers<[1], [0], [0], [1], [0, 0, 1, 1], [], []>} : vector<8x128xbf16>, vector<128x128xbf16>, vector<8x128xf32> -> vector<8x128xf32>
    %69 = arith.subf %52, %68 : vector<8x128xf32>
    %cst_60 = arith.constant 0.000000e+00 : f32
    %70 = vector.broadcast %cst_60 : f32 to vector<8x128xf32>
    %71 = arith.maximumf %69, %70 : vector<8x128xf32>
    %c0_61 = arith.constant 0 : index
    %c4_62 = arith.constant 4 : index
    %c0_63 = arith.constant 0 : index
    %c0_64 = arith.constant 0 : index
    %72 = vector.load %arg3[%c0_61, %c4_62, %c0_63, %c0_64] : memref<2x6x8x128xf32, #tpu.memory_space<vmem>>, vector<1x1x8x128xf32>
    %73 = vector.shape_cast %72 : vector<1x1x8x128xf32> to vector<8x128xf32>
    %74 = vector.shape_cast %71 : vector<8x128xf32> to vector<1x1x8x128xf32>
    tpu.vector_store %arg3[%c0_61, %c4_62, %c0_63, %c0_64], %74 {strides = array<i32>} : memref<2x6x8x128xf32, #tpu.memory_space<vmem>>, vector<1x1x8x128xf32>,
    %cst_65 = arith.constant 0.000000e+00 : f32
    %75 = vector.broadcast %cst_65 : f32 to vector<8x128xf32>
    %76 = arith.subf %75, %69 : vector<8x128xf32>
    %cst_66 = arith.constant 0.000000e+00 : f32
    %77 = vector.broadcast %cst_66 : f32 to vector<8x128xf32>
    %78 = arith.maximumf %76, %77 : vector<8x128xf32>
    %c1_67 = arith.constant 1 : index
    %c4_68 = arith.constant 4 : index
    %c0_69 = arith.constant 0 : index
    %c0_70 = arith.constant 0 : index
    %79 = vector.load %arg3[%c1_67, %c4_68, %c0_69, %c0_70] : memref<2x6x8x128xf32, #tpu.memory_space<vmem>>, vector<1x1x8x128xf32>
    %80 = vector.shape_cast %79 : vector<1x1x8x128xf32> to vector<8x128xf32>
    %81 = vector.shape_cast %78 : vector<8x128xf32> to vector<1x1x8x128xf32>
    tpu.vector_store %arg3[%c1_67, %c4_68, %c0_69, %c0_70], %81 {strides = array<i32>} : memref<2x6x8x128xf32, #tpu.memory_space<vmem>>, vector<1x1x8x128xf32>,
    %cst_71 = arith.constant 0.000000e+00 : f32
    %82 = vector.broadcast %cst_71 : f32 to vector<8x128xf32>
    %83 = arith.maximumf %68, %82 : vector<8x128xf32>
    %c0_72 = arith.constant 0 : index
    %c5 = arith.constant 5 : index
    %c0_73 = arith.constant 0 : index
    %c0_74 = arith.constant 0 : index
    %84 = vector.load %arg3[%c0_72, %c5, %c0_73, %c0_74] : memref<2x6x8x128xf32, #tpu.memory_space<vmem>>, vector<1x1x8x128xf32>
    %85 = vector.shape_cast %84 : vector<1x1x8x128xf32> to vector<8x128xf32>
    %86 = vector.shape_cast %83 : vector<8x128xf32> to vector<1x1x8x128xf32>
    tpu.vector_store %arg3[%c0_72, %c5, %c0_73, %c0_74], %86 {strides = array<i32>} : memref<2x6x8x128xf32, #tpu.memory_space<vmem>>, vector<1x1x8x128xf32>,
    %cst_75 = arith.constant 0.000000e+00 : f32
    %87 = vector.broadcast %cst_75 : f32 to vector<8x128xf32>
    %88 = arith.subf %87, %68 : vector<8x128xf32>
    %cst_76 = arith.constant 0.000000e+00 : f32
    %89 = vector.broadcast %cst_76 : f32 to vector<8x128xf32>
    %90 = arith.maximumf %88, %89 : vector<8x128xf32>
    %c1_77 = arith.constant 1 : index
    %c5_78 = arith.constant 5 : index
    %c0_79 = arith.constant 0 : index
    %c0_80 = arith.constant 0 : index
    %91 = vector.load %arg3[%c1_77, %c5_78, %c0_79, %c0_80] : memref<2x6x8x128xf32, #tpu.memory_space<vmem>>, vector<1x1x8x128xf32>
    %92 = vector.shape_cast %91 : vector<1x1x8x128xf32> to vector<8x128xf32>
    %93 = vector.shape_cast %90 : vector<8x128xf32> to vector<1x1x8x128xf32>
    tpu.vector_store %arg3[%c1_77, %c5_78, %c0_79, %c0_80], %93 {strides = array<i32>} : memref<2x6x8x128xf32, #tpu.memory_space<vmem>>, vector<1x1x8x128xf32>,
    return
  }
  func.func @transform_0(%arg0: i32) -> (i32, i32, i32) {
    %c0_i32 = arith.constant 0 : i32
    %c0_i32_0 = arith.constant 0 : i32
    %c0_i32_1 = arith.constant 0 : i32
    %c0_i32_2 = arith.constant 0 : i32
    return %c0_i32, %c0_i32_0, %c0_i32_1 : i32, i32, i32
  }
  func.func @transform_1(%arg0: i32) -> (i32, i32) {
    %c0_i32 = arith.constant 0 : i32
    %c0_i32_0 = arith.constant 0 : i32
    return %arg0, %c0_i32 : i32, i32
  }
  func.func @transform_2(%arg0: i32) -> (i32, i32, i32, i32) {
    %c0_i32 = arith.constant 0 : i32
    %c0_i32_0 = arith.constant 0 : i32
    %c0_i32_1 = arith.constant 0 : i32
    %c0_i32_2 = arith.constant 0 : i32
    return %c0_i32, %c0_i32_0, %arg0, %c0_i32_1 : i32, i32, i32, i32
  }
}

</mosaic_0001>

<bundles_post_ra>
// kernel: tpu_custom_call.1
= control target key start
LH: loop header
LB: loop body
LE: loop exit
PB: predicated region body
PF: predicated region fallthrough
CT: control target
= control target key end

     0   :  { %7 = vsyncpa [#allocation3], 0  ;;  %s1024_s0 = inlined_call_operand.hbm [shape: bf16[5,128,128], index: 0, kind: input, shape index: {}]   ;;  %s1025_s1 = inlined_call_operand.hbm [shape: f32[8,128], index: 1, kind: input, shape index: {}]   ;;  %s1026_s2 = inlined_call_operand.hbm [shape: f32[2,6,8,128], index: 2, kind: output, shape index: {}]  }
   0x1   :  { %8 = vsyncpa [#allocation6], 0 }
   0x2   :  { %9 = vsyncpa [#allocation4], 0  ;;  %s929_s9 = smov [#allocation2]  }
   0x3   :  { %s15_s10 = sshll.u32 %s929_s9, 4  ;;  %s16_s10 = int_to_ptr.vmem [resolvable:$true] %s15_s10 }
   0x4   :  { %s871_s11 = scalar_lea.vmem %s16_s10, 5120  ;;  %p876_p1 = scmp.lt.s32.totalorder %s16_s10, %s16_s10 }
   0x5   :  { %p872_p0 = scmp.ne.s32.totalorder %s16_s10, %s871_s11  ;;  %p877_p2 = scmp.lt.s32.totalorder %s871_s11, %s871_s11 }
   0x7   :  { %p878_p3 = por %p877_p2, %p876_p1 }
   0x9   :  { %p879_p4 = pnand %p878_p3, %p872_p0 }
   0xb   :  { %882 = shalt.err (!%p879_p4)
}
   0xc   :  { %s930_s12 = smov 64   ;;  %s931_s13 = smov 4  }
   0xd   :  { %21 = dma.hbm_to_vmem [thread:$0]  %s1024_s0, 5120, %s16_s10, [#allocation3], %s930_s12, %s930_s12, %s931_s13  }
   0xe   :  { %s932_s16 = smov [#allocation5]  }
   0xf   :  { %s28_s17 = sshll.u32 %s932_s16, 4  ;;  %s29_s17 = int_to_ptr.vmem [resolvable:$true] %s28_s17 }
  0x10   :  { %s891_s18 = scalar_lea.vmem %s29_s17, 128  ;;  %p896_p6 = scmp.lt.s32.totalorder %s29_s17, %s29_s17 }
  0x11   :  { %p892_p5 = scmp.ne.s32.totalorder %s29_s17, %s891_s18  ;;  %p897_p7 = scmp.lt.s32.totalorder %s891_s18, %s891_s18 }
  0x13   :  { %p898_p8 = por %p897_p7, %p896_p6 }
  0x15   :  { %p899_p9 = pnand %p898_p8, %p892_p5 }
  0x17   :  { %902 = shalt.err (!%p899_p9)
}
  0x18   :  { %31 = dma.hbm_to_vmem [thread:$0]  %s1025_s1, 128, %s29_s17, [#allocation6]  }
  0x19   :  { %923 = dma.done.wait [#allocation3], 5120  }
  0x1a   :  { %924 = vsyncadd [#allocation3], 4294962176 }
  0x1b   :  { %925 = dma.done.wait [#allocation6], 128  }
  0x1c   :  { %926 = vsyncadd [#allocation6], 4294967168  ;;  %v933_v0 = vmov 0.0   ;;  %vm934_vm0 = vmmov 0   ;;  %v823_v1 = vld [vmem:[#allocation2 + $0x38] sm:$0xff]   ;;  %v825_v3 = vld [vmem:[#allocation2 + $0x30] sm:$0xff]  }
  0x1d   :  { %714 = vmatprep.subr.bf16.mxu0 %v933_v0  ;;  %734 = vmatprep.subr.bf16.mxu1 %v933_v0  ;;  %v824_v2 = vld [vmem:[#allocation2 + $0x78] sm:$0xff]   ;;  %v826_v4 = vld [vmem:[#allocation2 + $0x70] sm:$0xff]   ;;  %v827_v5 = vld [vmem:[#allocation2 + $0x28] sm:$0xff]   ;;  %s935_s0 = smov [#allocation7]  }
  0x1e   :  { %730 = vmatprep.mubr.msk.bf16.mxu0 %vm934_vm0, %v933_v0  ;;  %750 = vmatprep.mubr.msk.bf16.mxu1 %vm934_vm0, %v933_v0  ;;  %v828_v6 = vld [vmem:[#allocation2 + $0x68] sm:$0xff]   ;;  %v829_v7 = vld [vmem:[#allocation2 + $0x20] sm:$0xff]   ;;  %v831_v9 = vld [vmem:[#allocation2 + $0x18] sm:$0xff]   ;;  %s616_s1 = sshll.u32 %s935_s0, 4  ;;  %s617_s1 = int_to_ptr.vmem [resolvable:$true] %s616_s1 }
  0x1f   :  { %715 = vmatpush3.bf16.msra.mxu0 %v823_v1  ;;  %735 = vmatpush3.bf16.msra.mxu1 %v824_v2  ;;  %v830_v8 = vld [vmem:[#allocation2 + $0x60] sm:$0xff]   ;;  %v832_v10 = vld [vmem:[#allocation2 + $0x58] sm:$0xff]   ;;  %v833_v11 = vld [vmem:[#allocation2 + $0x10] sm:$0xff]   ;;  %s903_s21 = scalar_lea.vmem %s617_s1, 1536  ;;  %p908_p11 = scmp.lt.s32.totalorder %s617_s1, %s617_s1 }
  0x20   :  { %716 = vmatprep.subr.bf16.mxu0 %v933_v0  ;;  %736 = vmatprep.subr.bf16.mxu1 %v933_v0  ;;  %v834_v12 = vld [vmem:[#allocation2 + $0x50] sm:$0xff]   ;;  %v835_v13 = vld [vmem:[#allocation2 + $0x8] sm:$0xff]   ;;  %v837_v15 = vld [vmem:[#allocation2] sm:$0xff]   ;;  %p904_p10 = scmp.ne.s32.totalorder %s617_s1, %s903_s21  ;;  %p909_p12 = scmp.lt.s32.totalorder %s903_s21, %s903_s21 }
  0x21   :  { %v836_v14 = vld [vmem:[#allocation2 + $0x48] sm:$0xff]   ;;  %v977_v16 = vld [vmem:[#allocation5] sm:$0xff]  ;;  %v839_v19 = vld [vmem:[#allocation2 + $0xb8] sm:$0xff]  }
  0x22   :  { %v838_v17 = vld [vmem:[#allocation2 + $0x40] sm:$0xff]   ;;  %v983_v18 = vpack.c.bf16 %v977_v16, %v977_v16  ;;  %v840_v20 = vld [vmem:[#allocation2 + $0xf8] sm:$0xff]   ;;  %v841_v21 = vld [vmem:[#allocation2 + $0xb0] sm:$0xff]   ;;  %p910_p13 = por %p909_p12, %p908_p11 }
  0x23   :  { %717 = vmatpush3.bf16.msra.mxu0 %v825_v3  ;;  %737 = vmatpush3.bf16.msra.mxu1 %v826_v4  ;;  %v842_v22 = vld [vmem:[#allocation2 + $0xf0] sm:$0xff]   ;;  %v843_v23 = vld [vmem:[#allocation2 + $0xa8] sm:$0xff]   ;;  %v845_v25 = vld [vmem:[#allocation2 + $0xa0] sm:$0xff]  }
  0x24   :  { %718 = vmatprep.subr.bf16.mxu0 %v933_v0  ;;  %738 = vmatprep.subr.bf16.mxu1 %v933_v0  ;;  %v844_v24 = vld [vmem:[#allocation2 + $0xe8] sm:$0xff]   ;;  %v846_v26 = vld [vmem:[#allocation2 + $0xe0] sm:$0xff]   ;;  %v847_v27 = vld [vmem:[#allocation2 + $0x98] sm:$0xff]   ;;  %p911_p0 = pnand %p910_p13, %p904_p10 }
  0x25   :  { %v848_v28 = vld [vmem:[#allocation2 + $0xd8] sm:$0xff]   ;;  %v849_v29 = vld [vmem:[#allocation2 + $0x90] sm:$0xff]   ;;  %v851_v31 = vld [vmem:[#allocation2 + $0x88] sm:$0xff]  }
  0x26   :  { %v850_v30 = vld [vmem:[#allocation2 + $0xd0] sm:$0xff]   ;;  %v852_v32 = vld [vmem:[#allocation2 + $0xc8] sm:$0xff]   ;;  %v853_v33 = vld [vmem:[#allocation2 + $0x80] sm:$0xff]  }
  0x27   :  { %719 = vmatpush3.bf16.msra.mxu0 %v827_v5  ;;  %739 = vmatpush3.bf16.msra.mxu1 %v828_v6  ;;  %v854_v34 = vld [vmem:[#allocation2 + $0xc0] sm:$0xff]   ;;  %v855_v35 = vld [vmem:[#allocation2 + $0x138] sm:$0xff]   ;;  %v856_v36 = vld [vmem:[#allocation2 + $0x130] sm:$0xff]  }
  0x28   :  { %720 = vmatprep.subr.bf16.mxu0 %v933_v0  ;;  %740 = vmatprep.subr.bf16.mxu1 %v933_v0  ;;  %v857_v37 = vld [vmem:[#allocation2 + $0x128] sm:$0xff]   ;;  %v858_v38 = vld [vmem:[#allocation2 + $0x120] sm:$0xff]   ;;  %v859_v39 = vld [vmem:[#allocation2 + $0x118] sm:$0xff]  }
  0x29   :  { %v860_v40 = vld [vmem:[#allocation2 + $0x110] sm:$0xff]   ;;  %v861_v41 = vld [vmem:[#allocation2 + $0x108] sm:$0xff]   ;;  %v862_v42 = vld [vmem:[#allocation2 + $0x100] sm:$0xff]  }
  0x2b   :  { %721 = vmatpush3.bf16.msra.mxu0 %v829_v7  ;;  %741 = vmatpush3.bf16.msra.mxu1 %v830_v8 }
  0x2c   :  { %722 = vmatprep.subr.bf16.mxu0 %v933_v0  ;;  %742 = vmatprep.subr.bf16.mxu1 %v933_v0 }
  0x2f   :  { %723 = vmatpush3.bf16.msra.mxu0 %v831_v9  ;;  %743 = vmatpush3.bf16.msra.mxu1 %v832_v10 }
  0x30   :  { %724 = vmatprep.subr.bf16.mxu0 %v933_v0  ;;  %744 = vmatprep.subr.bf16.mxu1 %v933_v0 }
  0x33   :  { %725 = vmatpush3.bf16.msra.mxu0 %v833_v11  ;;  %745 = vmatpush3.bf16.msra.mxu1 %v834_v12 }
  0x34   :  { %726 = vmatprep.subr.bf16.mxu0 %v933_v0  ;;  %746 = vmatprep.subr.bf16.mxu1 %v933_v0 }
  0x37   :  { %727 = vmatpush3.bf16.msra.mxu0 %v835_v13  ;;  %747 = vmatpush3.bf16.msra.mxu1 %v836_v14 }
  0x38   :  { %728 = vmatprep.subr.bf16.mxu0 %v933_v0  ;;  %748 = vmatprep.subr.bf16.mxu1 %v933_v0 }
  0x3b   :  { %729 = vmatpush3.bf16.msra.mxu0 %v837_v15  ;;  %749 = vmatpush3.bf16.msra.mxu1 %v838_v17 }
  0x3c   :  { %754 = vmatprep.subr.bf16.mxu0 %v933_v0  ;;  %774 = vmatprep.subr.bf16.mxu1 %v933_v0 }
  0x3e   :  { %731 = vmatmul.mubr.bf16.vlgmr.msra.gmra.mxu0 %v983_v18  ;;  %751 = vmatmul.mubr.bf16.vlgmr.msra.gmra.mxu1 %v983_v18 }
  0x3f   :  { %755 = vmatpush3.bf16.msra.mxu0 %v839_v19  ;;  %775 = vmatpush3.bf16.msra.mxu1 %v840_v20 }
  0x40   :  { %756 = vmatprep.subr.bf16.mxu0 %v933_v0  ;;  %776 = vmatprep.subr.bf16.mxu1 %v933_v0 }
  0x41   :  { %770 = vmatprep.mubr.msk.bf16.mxu0 %vm934_vm0, %v933_v0  ;;  %790 = vmatprep.mubr.msk.bf16.mxu1 %vm934_vm0, %v933_v0 }
  0x43   :  { %757 = vmatpush3.bf16.msra.mxu0 %v841_v21  ;;  %777 = vmatpush3.bf16.msra.mxu1 %v842_v22 }
  0x44   :  { %758 = vmatprep.subr.bf16.mxu0 %v933_v0  ;;  %778 = vmatprep.subr.bf16.mxu1 %v933_v0 }
  0x47   :  { %759 = vmatpush3.bf16.msra.mxu0 %v843_v23  ;;  %779 = vmatpush3.bf16.msra.mxu1 %v844_v24 }
  0x48   :  { %760 = vmatprep.subr.bf16.mxu0 %v933_v0  ;;  %780 = vmatprep.subr.bf16.mxu1 %v933_v0 }
  0x4b   :  { %761 = vmatpush3.bf16.msra.mxu0 %v845_v25  ;;  %781 = vmatpush3.bf16.msra.mxu1 %v846_v26 }
  0x4c   :  { %762 = vmatprep.subr.bf16.mxu0 %v933_v0  ;;  %782 = vmatprep.subr.bf16.mxu1 %v933_v0 }
  0x4f   :  { %763 = vmatpush3.bf16.msra.mxu0 %v847_v27  ;;  %783 = vmatpush3.bf16.msra.mxu1 %v848_v28 }
  0x50   :  { %764 = vmatprep.subr.bf16.mxu0 %v933_v0  ;;  %784 = vmatprep.subr.bf16.mxu1 %v933_v0 }
  0x53   :  { %765 = vmatpush3.bf16.msra.mxu0 %v849_v29  ;;  %785 = vmatpush3.bf16.msra.mxu1 %v850_v30 }
  0x54   :  { %766 = vmatprep.subr.bf16.mxu0 %v933_v0  ;;  %786 = vmatprep.subr.bf16.mxu1 %v933_v0 }
  0x57   :  { %767 = vmatpush3.bf16.msra.mxu0 %v851_v31  ;;  %787 = vmatpush3.bf16.msra.mxu1 %v852_v32 }
  0x58   :  { %768 = vmatprep.subr.bf16.mxu0 %v933_v0  ;;  %788 = vmatprep.subr.bf16.mxu1 %v933_v0 }
  0x5b   :  { %769 = vmatpush3.bf16.msra.mxu0 %v853_v33  ;;  %789 = vmatpush3.bf16.msra.mxu1 %v854_v34 }
  0x5c   :  { %794 = vmatprep.subr.bf16.mxu0 %v933_v0 }
  0x5e   :  { %771 = vmatmul.mubr.bf16.vlgmr.msra.gmra.mxu0 %v983_v18  ;;  %791 = vmatmul.mubr.bf16.vlgmr.msra.gmra.mxu1 %v983_v18 }
  0x5f   :  { %795 = vmatpush3.bf16.msra.mxu0 %v855_v35  ;;  %810 = vmatprep.mubr.msk.bf16.mxu0 %vm934_vm0, %v933_v0 }
  0x60   :  { %796 = vmatprep.subr.bf16.mxu0 %v933_v0 }
  0x63   :  { %797 = vmatpush3.bf16.msra.mxu0 %v856_v36 }
  0x64   :  { %798 = vmatprep.subr.bf16.mxu0 %v933_v0 }
  0x67   :  { %799 = vmatpush3.bf16.msra.mxu0 %v857_v37 }
  0x68   :  { %800 = vmatprep.subr.bf16.mxu0 %v933_v0 }
  0x6b   :  { %801 = vmatpush3.bf16.msra.mxu0 %v858_v38 }
  0x6c   :  { %802 = vmatprep.subr.bf16.mxu0 %v933_v0 }
  0x6f   :  { %803 = vmatpush3.bf16.msra.mxu0 %v859_v39 }
  0x70   :  { %804 = vmatprep.subr.bf16.mxu0 %v933_v0 }
  0x73   :  { %805 = vmatpush3.bf16.msra.mxu0 %v860_v40 }
  0x74   :  { %806 = vmatprep.subr.bf16.mxu0 %v933_v0 }
  0x77   :  { %807 = vmatpush3.bf16.msra.mxu0 %v861_v41 }
  0x78   :  { %808 = vmatprep.subr.bf16.mxu0 %v933_v0 }
  0x7b   :  { %809 = vmatpush3.bf16.msra.mxu0 %v862_v42 }
  0x7e   :  { %811 = vmatmul.mubr.bf16.vlgmr.msra.gmra.mxu0 %v983_v18 }
  0xfe   :  { %v139_v43 = vpop.f32.mrf.mxu0  ;;  %v251_v45 = vpop.f32.mrf.mxu1 }
  0xff   :  { %v145_v44 = vsub.f32 %v977_v16, %v139_v43  ;;  %v257_v46 = vsub.f32 %v139_v43, %v251_v45 }
 0x100   :  { %v732_v47 = vpop.f32.mrf.mxu0  ;;  %v752_v50 = vpop.f32.mrf.mxu1 }
 0x101   :  { %v146_v48 = vmax.f32 %v145_v44, 0.0  ;;  %v148_v49 = vsub.f32 0.0, %v145_v44  ;;  %v258_v51 = vmax.f32 %v257_v46, 0.0  ;;  %v261_v52 = vsub.f32 0.0, %v257_v46 }
 0x102   :  { %v142_v53 = vpop.f32.mrf.mxu0  ;;  %v254_v55 = vpop.f32.mrf.mxu1 }
 0x103   :  { %147 = vst [vmem:[#allocation7] sm:$0xff] %v146_v48  ;;  %v149_v54 = vmax.f32 %v148_v49, 0.0  ;;  %260 = vst [vmem:[#allocation7 + $0x8] sm:$0xff] %v258_v51  ;;  %v262_v56 = vmax.f32 %v261_v52, 0.0 }
 0x104   :  { %v733_v57 = vpop.f32.mrf.mxu0  ;;  %v753_v58 = vpop.f32.mrf.mxu1 }
 0x105   :  { %151 = vst [vmem:[#allocation7 + $0x30] sm:$0xff] %v149_v54  ;;  %264 = vst [vmem:[#allocation7 + $0x38] sm:$0xff] %v262_v56 }
 0x11e   :  { %v364_v59 = vpop.f32.mrf.mxu0  ;;  %v477_v61 = vpop.f32.mrf.mxu1 }
 0x11f   :  { %v370_v60 = vsub.f32 %v251_v45, %v364_v59  ;;  %v483_v62 = vsub.f32 %v364_v59, %v477_v61 }
 0x120   :  { %v772_v63 = vpop.f32.mrf.mxu0  ;;  %v792_v2 = vpop.f32.mrf.mxu1 }
 0x121   :  { %v371_v0 = vmax.f32 %v370_v60, 0.0  ;;  %v374_v1 = vsub.f32 0.0, %v370_v60  ;;  %v484_v3 = vmax.f32 %v483_v62, 0.0  ;;  %v487_v4 = vsub.f32 0.0, %v483_v62 }
 0x122   :  { %v367_v5 = vpop.f32.mrf.mxu0  ;;  %v480_v7 = vpop.f32.mrf.mxu1 }
 0x123   :  { %373 = vst [vmem:[#allocation7 + $0x10] sm:$0xff] %v371_v0  ;;  %v375_v6 = vmax.f32 %v374_v1, 0.0  ;;  %486 = vst [vmem:[#allocation7 + $0x18] sm:$0xff] %v484_v3  ;;  %v488_v8 = vmax.f32 %v487_v4, 0.0 }
 0x124   :  { %v773_v9 = vpop.f32.mrf.mxu0  ;;  %v793_v10 = vpop.f32.mrf.mxu1 }
 0x125   :  { %377 = vst [vmem:[#allocation7 + $0x40] sm:$0xff] %v375_v6  ;;  %490 = vst [vmem:[#allocation7 + $0x48] sm:$0xff] %v488_v8 }
 0x13e   :  { %v590_v11 = vpop.f32.mrf.mxu0 }
 0x13f   :  { %v596_v12 = vsub.f32 %v477_v61, %v590_v11  ;;  %v604_v13 = vmax.f32 %v590_v11, 0.0  ;;  %v607_v14 = vsub.f32 0.0, %v590_v11 }
 0x140   :  { %v812_v15 = vpop.f32.mrf.mxu0 }
 0x141   :  { %v597_v16 = vmax.f32 %v596_v12, 0.0  ;;  %v600_v17 = vsub.f32 0.0, %v596_v12  ;;  %606 = vst [vmem:[#allocation7 + $0x28] sm:$0xff] %v604_v13  ;;  %v608_v18 = vmax.f32 %v607_v14, 0.0 }
 0x142   :  { %v593_v19 = vpop.f32.mrf.mxu0 }
 0x143   :  { %599 = vst [vmem:[#allocation7 + $0x20] sm:$0xff] %v597_v16  ;;  %v601_v20 = vmax.f32 %v600_v17, 0.0  ;;  %610 = vst [vmem:[#allocation7 + $0x58] sm:$0xff] %v608_v18 }
 0x144   :  { %v813_v21 = vpop.f32.mrf.mxu0 }
 0x145   :  { %603 = vst [vmem:[#allocation7 + $0x50] sm:$0xff] %v601_v20 }
 0x146   :  { %914 = shalt.err (!%p911_p0)
}
 0x147   :  { %s936_s22 = smov 128   ;;  %s937_s23 = smov 8  }
 0x148   :  { %622 = dma.vmem_to_hbm [thread:$0]  %s617_s1, 1536, %s1026_s2, [#allocation4], %s936_s22, %s936_s22, %s937_s23  }
 0x149   :  { %927 = dma.done.wait [#allocation4], 1536  }
 0x14a   :  { %928 = vsyncadd [#allocation4], 4294965760 }
 0x14b   :  { %626 = vsyncpa [#allocation3], 1 }
 0x14c   :  { %627 = vsyncpa [#allocation6], 1 }
 0x14d   :  { %628 = vsyncpa [#allocation4], 1 }

// kernel: tpu_custom_call.1
= control target key start
LH: loop header
LB: loop body
LE: loop exit
PB: predicated region body
PF: predicated region fallthrough
CT: control target
= control target key end

     0   :  { %7 = vsyncpa [#allocation3], 0  ;;  %s1024_s0 = inlined_call_operand.hbm [shape: bf16[5,128,128], index: 0, kind: input, shape index: {}]   ;;  %s1025_s1 = inlined_call_operand.hbm [shape: f32[8,128], index: 1, kind: input, shape index: {}]   ;;  %s1026_s2 = inlined_call_operand.hbm [shape: f32[2,6,8,128], index: 2, kind: output, shape index: {}]  }
   0x1   :  { %8 = vsyncpa [#allocation6], 0 }
   0x2   :  { %9 = vsyncpa [#allocation4], 0  ;;  %s929_s9 = smov [#allocation2]  }
   0x3   :  { %s15_s10 = sshll.u32 %s929_s9, 4  ;;  %s16_s10 = int_to_ptr.vmem [resolvable:$true] %s15_s10 }
   0x4   :  { %s871_s11 = scalar_lea.vmem %s16_s10, 5120  ;;  %p876_p1 = scmp.lt.s32.totalorder %s16_s10, %s16_s10 }
   0x5   :  { %p872_p0 = scmp.ne.s32.totalorder %s16_s10, %s871_s11  ;;  %p877_p2 = scmp.lt.s32.totalorder %s871_s11, %s871_s11 }
   0x7   :  { %p878_p3 = por %p877_p2, %p876_p1 }
   0x9   :  { %p879_p4 = pnand %p878_p3, %p872_p0 }
   0xb   :  { %882 = shalt.err (!%p879_p4)
}
   0xc   :  { %s930_s12 = smov 64   ;;  %s931_s13 = smov 4  }
   0xd   :  { %21 = dma.hbm_to_vmem [thread:$0]  %s1024_s0, 5120, %s16_s10, [#allocation3], %s930_s12, %s930_s12, %s931_s13  }
   0xe   :  { %s932_s16 = smov [#allocation5]  }
   0xf   :  { %s28_s17 = sshll.u32 %s932_s16, 4  ;;  %s29_s17 = int_to_ptr.vmem [resolvable:$true] %s28_s17 }
  0x10   :  { %s891_s18 = scalar_lea.vmem %s29_s17, 128  ;;  %p896_p6 = scmp.lt.s32.totalorder %s29_s17, %s29_s17 }
  0x11   :  { %p892_p5 = scmp.ne.s32.totalorder %s29_s17, %s891_s18  ;;  %p897_p7 = scmp.lt.s32.totalorder %s891_s18, %s891_s18 }
  0x13   :  { %p898_p8 = por %p897_p7, %p896_p6 }
  0x15   :  { %p899_p9 = pnand %p898_p8, %p892_p5 }
  0x17   :  { %902 = shalt.err (!%p899_p9)
}
  0x18   :  { %31 = dma.hbm_to_vmem [thread:$0]  %s1025_s1, 128, %s29_s17, [#allocation6]  }
  0x19   :  { %923 = dma.done.wait [#allocation3], 5120  }
  0x1a   :  { %924 = vsyncadd [#allocation3], 4294962176 }
  0x1b   :  { %925 = dma.done.wait [#allocation6], 128  }
  0x1c   :  { %926 = vsyncadd [#allocation6], 4294967168  ;;  %v933_v0 = vmov 0.0   ;;  %vm934_vm0 = vmmov 0   ;;  %v823_v1 = vld [vmem:[#allocation2 + $0x38] sm:$0xff]   ;;  %v825_v3 = vld [vmem:[#allocation2 + $0x30] sm:$0xff]  }
  0x1d   :  { %714 = vmatprep.subr.bf16.mxu0 %v933_v0  ;;  %734 = vmatprep.subr.bf16.mxu1 %v933_v0  ;;  %v824_v2 = vld [vmem:[#allocation2 + $0x78] sm:$0xff]   ;;  %v826_v4 = vld [vmem:[#allocation2 + $0x70] sm:$0xff]   ;;  %v827_v5 = vld [vmem:[#allocation2 + $0x28] sm:$0xff]   ;;  %s935_s0 = smov [#allocation7]  }
  0x1e   :  { %730 = vmatprep.mubr.msk.bf16.mxu0 %vm934_vm0, %v933_v0  ;;  %750 = vmatprep.mubr.msk.bf16.mxu1 %vm934_vm0, %v933_v0  ;;  %v828_v6 = vld [vmem:[#allocation2 + $0x68] sm:$0xff]   ;;  %v829_v7 = vld [vmem:[#allocation2 + $0x20] sm:$0xff]   ;;  %v831_v9 = vld [vmem:[#allocation2 + $0x18] sm:$0xff]   ;;  %s616_s1 = sshll.u32 %s935_s0, 4  ;;  %s617_s1 = int_to_ptr.vmem [resolvable:$true] %s616_s1 }
  0x1f   :  { %715 = vmatpush3.bf16.msra.mxu0 %v823_v1  ;;  %735 = vmatpush3.bf16.msra.mxu1 %v824_v2  ;;  %v830_v8 = vld [vmem:[#allocation2 + $0x60] sm:$0xff]   ;;  %v832_v10 = vld [vmem:[#allocation2 + $0x58] sm:$0xff]   ;;  %v833_v11 = vld [vmem:[#allocation2 + $0x10] sm:$0xff]   ;;  %s903_s21 = scalar_lea.vmem %s617_s1, 1536  ;;  %p908_p11 = scmp.lt.s32.totalorder %s617_s1, %s617_s1 }
  0x20   :  { %716 = vmatprep.subr.bf16.mxu0 %v933_v0  ;;  %736 = vmatprep.subr.bf16.mxu1 %v933_v0  ;;  %v834_v12 = vld [vmem:[#allocation2 + $0x50] sm:$0xff]   ;;  %v835_v13 = vld [vmem:[#allocation2 + $0x8] sm:$0xff]   ;;  %v837_v15 = vld [vmem:[#allocation2] sm:$0xff]   ;;  %p904_p10 = scmp.ne.s32.totalorder %s617_s1, %s903_s21  ;;  %p909_p12 = scmp.lt.s32.totalorder %s903_s21, %s903_s21 }
  0x21   :  { %v836_v14 = vld [vmem:[#allocation2 + $0x48] sm:$0xff]   ;;  %v977_v16 = vld [vmem:[#allocation5] sm:$0xff]  ;;  %v839_v19 = vld [vmem:[#allocation2 + $0xb8] sm:$0xff]  }
  0x22   :  { %v838_v17 = vld [vmem:[#allocation2 + $0x40] sm:$0xff]   ;;  %v983_v18 = vpack.c.bf16 %v977_v16, %v977_v16  ;;  %v840_v20 = vld [vmem:[#allocation2 + $0xf8] sm:$0xff]   ;;  %v841_v21 = vld [vmem:[#allocation2 + $0xb0] sm:$0xff]   ;;  %p910_p13 = por %p909_p12, %p908_p11 }
  0x23   :  { %717 = vmatpush3.bf16.msra.mxu0 %v825_v3  ;;  %737 = vmatpush3.bf16.msra.mxu1 %v826_v4  ;;  %v842_v22 = vld [vmem:[#allocation2 + $0xf0] sm:$0xff]   ;;  %v843_v23 = vld [vmem:[#allocation2 + $0xa8] sm:$0xff]   ;;  %v845_v25 = vld [vmem:[#allocation2 + $0xa0] sm:$0xff]  }
  0x24   :  { %718 = vmatprep.subr.bf16.mxu0 %v933_v0  ;;  %738 = vmatprep.subr.bf16.mxu1 %v933_v0  ;;  %v844_v24 = vld [vmem:[#allocation2 + $0xe8] sm:$0xff]   ;;  %v846_v26 = vld [vmem:[#allocation2 + $0xe0] sm:$0xff]   ;;  %v847_v27 = vld [vmem:[#allocation2 + $0x98] sm:$0xff]   ;;  %p911_p0 = pnand %p910_p13, %p904_p10 }
  0x25   :  { %v848_v28 = vld [vmem:[#allocation2 + $0xd8] sm:$0xff]   ;;  %v849_v29 = vld [vmem:[#allocation2 + $0x90] sm:$0xff]   ;;  %v851_v31 = vld [vmem:[#allocation2 + $0x88] sm:$0xff]  }
  0x26   :  { %v850_v30 = vld [vmem:[#allocation2 + $0xd0] sm:$0xff]   ;;  %v852_v32 = vld [vmem:[#allocation2 + $0xc8] sm:$0xff]   ;;  %v853_v33 = vld [vmem:[#allocation2 + $0x80] sm:$0xff]  }
  0x27   :  { %719 = vmatpush3.bf16.msra.mxu0 %v827_v5  ;;  %739 = vmatpush3.bf16.msra.mxu1 %v828_v6  ;;  %v854_v34 = vld [vmem:[#allocation2 + $0xc0] sm:$0xff]   ;;  %v855_v35 = vld [vmem:[#allocation2 + $0x138] sm:$0xff]   ;;  %v856_v36 = vld [vmem:[#allocation2 + $0x130] sm:$0xff]  }
  0x28   :  { %720 = vmatprep.subr.bf16.mxu0 %v933_v0  ;;  %740 = vmatprep.subr.bf16.mxu1 %v933_v0  ;;  %v857_v37 = vld [vmem:[#allocation2 + $0x128] sm:$0xff]   ;;  %v858_v38 = vld [vmem:[#allocation2 + $0x120] sm:$0xff]   ;;  %v859_v39 = vld [vmem:[#allocation2 + $0x118] sm:$0xff]  }
  0x29   :  { %v860_v40 = vld [vmem:[#allocation2 + $0x110] sm:$0xff]   ;;  %v861_v41 = vld [vmem:[#allocation2 + $0x108] sm:$0xff]   ;;  %v862_v42 = vld [vmem:[#allocation2 + $0x100] sm:$0xff]  }
  0x2b   :  { %721 = vmatpush3.bf16.msra.mxu0 %v829_v7  ;;  %741 = vmatpush3.bf16.msra.mxu1 %v830_v8 }
  0x2c   :  { %722 = vmatprep.subr.bf16.mxu0 %v933_v0  ;;  %742 = vmatprep.subr.bf16.mxu1 %v933_v0 }
  0x2f   :  { %723 = vmatpush3.bf16.msra.mxu0 %v831_v9  ;;  %743 = vmatpush3.bf16.msra.mxu1 %v832_v10 }
  0x30   :  { %724 = vmatprep.subr.bf16.mxu0 %v933_v0  ;;  %744 = vmatprep.subr.bf16.mxu1 %v933_v0 }
  0x33   :  { %725 = vmatpush3.bf16.msra.mxu0 %v833_v11  ;;  %745 = vmatpush3.bf16.msra.mxu1 %v834_v12 }
  0x34   :  { %726 = vmatprep.subr.bf16.mxu0 %v933_v0  ;;  %746 = vmatprep.subr.bf16.mxu1 %v933_v0 }
  0x37   :  { %727 = vmatpush3.bf16.msra.mxu0 %v835_v13  ;;  %747 = vmatpush3.bf16.msra.mxu1 %v836_v14 }
  0x38   :  { %728 = vmatprep.subr.bf16.mxu0 %v933_v0  ;;  %748 = vmatprep.subr.bf16.mxu1 %v933_v0 }
  0x3b   :  { %729 = vmatpush3.bf16.msra.mxu0 %v837_v15  ;;  %749 = vmatpush3.bf16.msra.mxu1 %v838_v17 }
  0x3c   :  { %754 = vmatprep.subr.bf16.mxu0 %v933_v0  ;;  %774 = vmatprep.subr.bf16.mxu1 %v933_v0 }
  0x3e   :  { %731 = vmatmul.mubr.bf16.vlgmr.msra.gmra.mxu0 %v983_v18  ;;  %751 = vmatmul.mubr.bf16.vlgmr.msra.gmra.mxu1 %v983_v18 }
  0x3f   :  { %755 = vmatpush3.bf16.msra.mxu0 %v839_v19  ;;  %775 = vmatpush3.bf16.msra.mxu1 %v840_v20 }
  0x40   :  { %756 = vmatprep.subr.bf16.mxu0 %v933_v0  ;;  %776 = vmatprep.subr.bf16.mxu1 %v933_v0 }
  0x41   :  { %770 = vmatprep.mubr.msk.bf16.mxu0 %vm934_vm0, %v933_v0  ;;  %790 = vmatprep.mubr.msk.bf16.mxu1 %vm934_vm0, %v933_v0 }
  0x43   :  { %757 = vmatpush3.bf16.msra.mxu0 %v841_v21  ;;  %777 = vmatpush3.bf16.msra.mxu1 %v842_v22 }
  0x44   :  { %758 = vmatprep.subr.bf16.mxu0 %v933_v0  ;;  %778 = vmatprep.subr.bf16.mxu1 %v933_v0 }
  0x47   :  { %759 = vmatpush3.bf16.msra.mxu0 %v843_v23  ;;  %779 = vmatpush3.bf16.msra.mxu1 %v844_v24 }
  0x48   :  { %760 = vmatprep.subr.bf16.mxu0 %v933_v0  ;;  %780 = vmatprep.subr.bf16.mxu1 %v933_v0 }
  0x4b   :  { %761 = vmatpush3.bf16.msra.mxu0 %v845_v25  ;;  %781 = vmatpush3.bf16.msra.mxu1 %v846_v26 }
  0x4c   :  { %762 = vmatprep.subr.bf16.mxu0 %v933_v0  ;;  %782 = vmatprep.subr.bf16.mxu1 %v933_v0 }
  0x4f   :  { %763 = vmatpush3.bf16.msra.mxu0 %v847_v27  ;;  %783 = vmatpush3.bf16.msra.mxu1 %v848_v28 }
  0x50   :  { %764 = vmatprep.subr.bf16.mxu0 %v933_v0  ;;  %784 = vmatprep.subr.bf16.mxu1 %v933_v0 }
  0x53   :  { %765 = vmatpush3.bf16.msra.mxu0 %v849_v29  ;;  %785 = vmatpush3.bf16.msra.mxu1 %v850_v30 }
  0x54   :  { %766 = vmatprep.subr.bf16.mxu0 %v933_v0  ;;  %786 = vmatprep.subr.bf16.mxu1 %v933_v0 }
  0x57   :  { %767 = vmatpush3.bf16.msra.mxu0 %v851_v31  ;;  %787 = vmatpush3.bf16.msra.mxu1 %v852_v32 }
  0x58   :  { %768 = vmatprep.subr.bf16.mxu0 %v933_v0  ;;  %788 = vmatprep.subr.bf16.mxu1 %v933_v0 }
  0x5b   :  { %769 = vmatpush3.bf16.msra.mxu0 %v853_v33  ;;  %789 = vmatpush3.bf16.msra.mxu1 %v854_v34 }
  0x5c   :  { %794 = vmatprep.subr.bf16.mxu0 %v933_v0 }
  0x5e   :  { %771 = vmatmul.mubr.bf16.vlgmr.msra.gmra.mxu0 %v983_v18  ;;  %791 = vmatmul.mubr.bf16.vlgmr.msra.gmra.mxu1 %v983_v18 }
  0x5f   :  { %795 = vmatpush3.bf16.msra.mxu0 %v855_v35  ;;  %810 = vmatprep.mubr.msk.bf16.mxu0 %vm934_vm0, %v933_v0 }
  0x60   :  { %796 = vmatprep.subr.bf16.mxu0 %v933_v0 }
  0x63   :  { %797 = vmatpush3.bf16.msra.mxu0 %v856_v36 }
  0x64   :  { %798 = vmatprep.subr.bf16.mxu0 %v933_v0 }
  0x67   :  { %799 = vmatpush3.bf16.msra.mxu0 %v857_v37 }
  0x68   :  { %800 = vmatprep.subr.bf16.mxu0 %v933_v0 }
  0x6b   :  { %801 = vmatpush3.bf16.msra.mxu0 %v858_v38 }
  0x6c   :  { %802 = vmatprep.subr.bf16.mxu0 %v933_v0 }
  0x6f   :  { %803 = vmatpush3.bf16.msra.mxu0 %v859_v39 }
  0x70   :  { %804 = vmatprep.subr.bf16.mxu0 %v933_v0 }
  0x73   :  { %805 = vmatpush3.bf16.msra.mxu0 %v860_v40 }
  0x74   :  { %806 = vmatprep.subr.bf16.mxu0 %v933_v0 }
  0x77   :  { %807 = vmatpush3.bf16.msra.mxu0 %v861_v41 }
  0x78   :  { %808 = vmatprep.subr.bf16.mxu0 %v933_v0 }
  0x7b   :  { %809 = vmatpush3.bf16.msra.mxu0 %v862_v42 }
  0x7e   :  { %811 = vmatmul.mubr.bf16.vlgmr.msra.gmra.mxu0 %v983_v18 }
  0xfe   :  { %v139_v43 = vpop.f32.mrf.mxu0  ;;  %v251_v45 = vpop.f32.mrf.mxu1 }
  0xff   :  { %v145_v44 = vsub.f32 %v977_v16, %v139_v43  ;;  %v257_v46 = vsub.f32 %v139_v43, %v251_v45 }
 0x100   :  { %v732_v47 = vpop.f32.mrf.mxu0  ;;  %v752_v50 = vpop.f32.mrf.mxu1 }
 0x101   :  { %v146_v48 = vmax.f32 %v145_v44, 0.0  ;;  %v148_v49 = vsub.f32 0.0, %v145_v44  ;;  %v258_v51 = vmax.f32 %v257_v46, 0.0  ;;  %v261_v52 = vsub.f32 0.0, %v257_v46 }
 0x102   :  { %v142_v53 = vpop.f32.mrf.mxu0  ;;  %v254_v55 = vpop.f32.mrf.mxu1 }
 0x103   :  { %147 = vst [vmem:[#allocation7] sm:$0xff] %v146_v48  ;;  %v149_v54 = vmax.f32 %v148_v49, 0.0  ;;  %260 = vst [vmem:[#allocation7 + $0x8] sm:$0xff] %v258_v51  ;;  %v262_v56 = vmax.f32 %v261_v52, 0.0 }
 0x104   :  { %v733_v57 = vpop.f32.mrf.mxu0  ;;  %v753_v58 = vpop.f32.mrf.mxu1 }
 0x105   :  { %151 = vst [vmem:[#allocation7 + $0x30] sm:$0xff] %v149_v54  ;;  %264 = vst [vmem:[#allocation7 + $0x38] sm:$0xff] %v262_v56 }
 0x11e   :  { %v364_v59 = vpop.f32.mrf.mxu0  ;;  %v477_v61 = vpop.f32.mrf.mxu1 }
 0x11f   :  { %v370_v60 = vsub.f32 %v251_v45, %v364_v59  ;;  %v483_v62 = vsub.f32 %v364_v59, %v477_v61 }
 0x120   :  { %v772_v63 = vpop.f32.mrf.mxu0  ;;  %v792_v2 = vpop.f32.mrf.mxu1 }
 0x121   :  { %v371_v0 = vmax.f32 %v370_v60, 0.0  ;;  %v374_v1 = vsub.f32 0.0, %v370_v60  ;;  %v484_v3 = vmax.f32 %v483_v62, 0.0  ;;  %v487_v4 = vsub.f32 0.0, %v483_v62 }
 0x122   :  { %v367_v5 = vpop.f32.mrf.mxu0  ;;  %v480_v7 = vpop.f32.mrf.mxu1 }
 0x123   :  { %373 = vst [vmem:[#allocation7 + $0x10] sm:$0xff] %v371_v0  ;;  %v375_v6 = vmax.f32 %v374_v1, 0.0  ;;  %486 = vst [vmem:[#allocation7 + $0x18] sm:$0xff] %v484_v3  ;;  %v488_v8 = vmax.f32 %v487_v4, 0.0 }
 0x124   :  { %v773_v9 = vpop.f32.mrf.mxu0  ;;  %v793_v10 = vpop.f32.mrf.mxu1 }
 0x125   :  { %377 = vst [vmem:[#allocation7 + $0x40] sm:$0xff] %v375_v6  ;;  %490 = vst [vmem:[#allocation7 + $0x48] sm:$0xff] %v488_v8 }
 0x13e   :  { %v590_v11 = vpop.f32.mrf.mxu0 }
 0x13f   :  { %v596_v12 = vsub.f32 %v477_v61, %v590_v11  ;;  %v604_v13 = vmax.f32 %v590_v11, 0.0  ;;  %v607_v14 = vsub.f32 0.0, %v590_v11 }
 0x140   :  { %v812_v15 = vpop.f32.mrf.mxu0 }
 0x141   :  { %v597_v16 = vmax.f32 %v596_v12, 0.0  ;;  %v600_v17 = vsub.f32 0.0, %v596_v12  ;;  %606 = vst [vmem:[#allocation7 + $0x28] sm:$0xff] %v604_v13  ;;  %v608_v18 = vmax.f32 %v607_v14, 0.0 }
 0x142   :  { %v593_v19 = vpop.f32.mrf.mxu0 }
 0x143   :  { %599 = vst [vmem:[#allocation7 + $0x20] sm:$0xff] %v597_v16  ;;  %v601_v20 = vmax.f32 %v600_v17, 0.0  ;;  %610 = vst [vmem:[#allocation7 + $0x58] sm:$0xff] %v608_v18 }
 0x144   :  { %v813_v21 = vpop.f32.mrf.mxu0 }
 0x145   :  { %603 = vst [vmem:[#allocation7 + $0x50] sm:$0xff] %v601_v20 }
 0x146   :  { %914 = shalt.err (!%p911_p0)
}
 0x147   :  { %s936_s22 = smov 128   ;;  %s937_s23 = smov 8  }
 0x148   :  { %622 = dma.vmem_to_hbm [thread:$0]  %s617_s1, 1536, %s1026_s2, [#allocation4], %s936_s22, %s936_s22, %s937_s23  }
 0x149   :  { %927 = dma.done.wait [#allocation4], 1536  }
 0x14a   :  { %928 = vsyncadd [#allocation4], 4294965760 }
 0x14b   :  { %626 = vsyncpa [#allocation3], 1 }
 0x14c   :  { %627 = vsyncpa [#allocation6], 1 }
 0x14d   :  { %628 = vsyncpa [#allocation4], 1 }

</bundles_post_ra>
